<compile_context>
chip_gen: v7x
topology: tpu7x:2x2x1
jax: 0.10.0
libtpu: 0.0.40
codegen_flags: <defaults>
</compile_context>

<pallas_src>
import functools

import jax
import jax.numpy as jnp
from jax.experimental import pallas as pl
from jax.experimental.pallas import tpu as pltpu

NUM_QUBITS = 2
NUM_LAYERS = 3
DIM = 2 ** NUM_QUBITS        # 4
LANES = 128
SUBLANES = 8
MIN_PALLAS_BATCH = 256       # below this the pure-XLA path is cheaper


# ----------------------------------------------------------------------------
# Parameter -> composed 4x4 circuit unitary (scalar glue, plain JAX/XLA).
# Each layer = (Rot(q0) (x) Rot(q1)) then CNOT(0->1) then CNOT(1->0).
# ----------------------------------------------------------------------------
def _rot_matrix(phi, theta, omega):
    """PennyLane Rot(phi, theta, omega) = RZ(omega) RY(theta) RZ(phi)."""
    c = jnp.cos(theta / 2.0)
    s = jnp.sin(theta / 2.0)
    e_mm = jnp.exp(-1j * (phi + omega) / 2.0)
    e_pp = jnp.exp(1j * (phi + omega) / 2.0)
    e_pm = jnp.exp(1j * (phi - omega) / 2.0)
    e_mp = jnp.exp(-1j * (phi - omega) / 2.0)
    return jnp.array(
        [[e_mm * c, -e_pm * s],
         [e_mp * s, e_pp * c]], dtype=jnp.complex64)


def _full_unitary(params):
    """params: (NUM_LAYERS*NUM_QUBITS*3,) -> composed (4, 4) complex64 unitary."""
    p = params.reshape(NUM_LAYERS, NUM_QUBITS, 3)
    # CNOT(control=0, target=1): flips b1 when b0 == 1 (wire 0 is the MSB).
    cnot01 = jnp.array([[1, 0, 0, 0],
                        [0, 1, 0, 0],
                        [0, 0, 0, 1],
                        [0, 0, 1, 0]], dtype=jnp.complex64)
    # CNOT(control=1, target=0): flips b0 when b1 == 1.
    cnot10 = jnp.array([[1, 0, 0, 0],
                        [0, 0, 0, 1],
                        [0, 0, 1, 0],
                        [0, 1, 0, 0]], dtype=jnp.complex64)
    full = jnp.eye(DIM, dtype=jnp.complex64)
    for l in range(NUM_LAYERS):
        r0 = _rot_matrix(p[l, 0, 0], p[l, 0, 1], p[l, 0, 2])
        r1 = _rot_matrix(p[l, 1, 0], p[l, 1, 1], p[l, 1, 2])
        layer = cnot10 @ (cnot01 @ jnp.kron(r0, r1))
        full = layer @ full
    return full


# ----------------------------------------------------------------------------
# Pallas kernel: one complex 4x4 transform via VPU scalar-broadcast FMAs on
# amplitude-major planes, |amp|^2, <Z0> = p0+p1-p2-p3, output (1-<Z0>)/2.
# ----------------------------------------------------------------------------
def _qdisc_kernel(u_ref, sre_ref, sim_ref, out_ref):
    # u_ref   : SMEM (2*DIM*DIM,) f32 = [Re(U).ravel(), Im(U).ravel()]
    # sre_ref : VMEM (DIM, rows_tile, 128) real planes, batch on (sublane, lane)
    # sim_ref : VMEM (DIM, rows_tile, 128) imag planes
    # out_ref : VMEM (rows_tile, 128) dense per-batch-element output
    sre = [sre_ref[j] for j in range(DIM)]
    sim = [sim_ref[j] for j in range(DIM)]

    expval = jnp.zeros_like(sre[0])
    for i in range(DIM):
        re_acc = jnp.zeros_like(sre[0])
        im_acc = jnp.zeros_like(sre[0])
        for j in range(DIM):
            ur = u_ref[i * DIM + j]                # Re(U[i, j]) scalar from SMEM
            ui = u_ref[DIM * DIM + i * DIM + j]    # Im(U[i, j])
            re_acc = re_acc + ur * sre[j] - ui * sim[j]
            im_acc = im_acc + ur * sim[j] + ui * sre[j]
        prob = re_acc * re_acc + im_acc * im_acc   # |amp_i|^2 plane
        # PauliZ on wire 0 (MSB): +1 for amplitude indices {0,1}, -1 for {2,3}.
        if i < DIM // 2:
            expval = expval + prob
        else:
            expval = expval - prob
    out_ref[...] = (1.0 - expval) * 0.5


# ----------------------------------------------------------------------------
# Wrappers
# ----------------------------------------------------------------------------
def _forward_xla(state2d, u):
    """Pure-JAX path (and reference): state2d (B, 4) complex, u (4, 4) complex."""
    psi = state2d.astype(jnp.complex64) @ u.T
    probs = jnp.real(psi) ** 2 + jnp.imag(psi) ** 2
    e = probs[:, 0] + probs[:, 1] - probs[:, 2] - probs[:, 3]
    return (1.0 - e) * 0.5


def _pick_rows_tile(rows_pad, max_rows_tile):
    """Largest multiple of 8 <= max_rows_tile that divides rows_pad."""
    best = SUBLANES
    t = SUBLANES
    while t <= min(rows_pad, max_rows_tile):
        if rows_pad % t == 0:
            best = t
        t += SUBLANES
    return best


@functools.partial(jax.jit, static_argnames=("max_rows_tile", "force_pallas"))
def quantum_discriminator_forward(state, params, *, max_rows_tile=256,
                                  force_pallas=False):
    """state: complex (4,) or (B, 4); params: float (18,). Returns (1-<Z0>)/2."""
    squeeze = state.ndim == 1
    if squeeze:
        state = state[None, :]
    batch = state.shape[0]

    u = _full_unitary(params.astype(jnp.float32))       # (4, 4) complex64

    if batch < MIN_PALLAS_BATCH and not force_pallas:
        out = _forward_xla(state, u)
        return out[0] if squeeze else out

    # --- Pallas path: amplitude-major (DIM, R, 128) real/imag planes ---
    rows = pl.cdiv(batch, LANES)
    rows_pad = pl.cdiv(rows, SUBLANES) * SUBLANES
    rows_tile = _pick_rows_tile(rows_pad, max_rows_tile)
    batch_pad = rows_pad * LANES

    sre = jnp.real(state).astype(jnp.float32)
    sim = jnp.imag(state).astype(jnp.float32)
    pad = batch_pad - batch
    if pad:
        sre = jnp.pad(sre, ((0, pad), (0, 0)))
        sim = jnp.pad(sim, ((0, pad), (0, 0)))
    # (B_pad, DIM) -> (DIM, R, 128): batch index b -> (row b // 128, lane b % 128)
    sre = sre.T.reshape(DIM, rows_pad, LANES)
    sim = sim.T.reshape(DIM, rows_pad, LANES)

    # Composed unitary as 32 flat f32 scalars for SMEM.
    u_flat = jnp.concatenate(
        [jnp.real(u).reshape(-1), jnp.imag(u).reshape(-1)]).astype(jnp.float32)

    out = pl.pallas_call(
        _qdisc_kernel,
        out_shape=jax.ShapeDtypeStruct((rows_pad, LANES), jnp.float32),
        grid_spec=pltpu.PrefetchScalarGridSpec(
            num_scalar_prefetch=0,
            grid=(rows_pad // rows_tile,),
            in_specs=[
                pl.BlockSpec(memory_space=pltpu.MemorySpace.SMEM),
                pl.BlockSpec((DIM, rows_tile, LANES), lambda r: (0, r, 0)),
                pl.BlockSpec((DIM, rows_tile, LANES), lambda r: (0, r, 0)),
            ],
            out_specs=pl.BlockSpec((rows_tile, LANES), lambda r: (r, 0)),
        ),
        compiler_params=pltpu.CompilerParams(
            dimension_semantics=("parallel",)),
    )(u_flat, sre, sim)

    out = out.reshape(batch_pad)[:batch]
    return out[0] if squeeze else out


if __name__ == "__main__":
    key = jax.random.PRNGKey(0)
    k_params, k_re, k_im = jax.random.split(key, 3)

    # Deterministic params, matching torch.rand(num_layers*num_qubits*3) * 2*pi.
    params = jax.random.uniform(
        k_params, (NUM_LAYERS * NUM_QUBITS * 3,), dtype=jnp.float32) * 2.0 * jnp.pi

    # Batch of normalized random 2-qubit states (complex64). B is deliberately
    # not a multiple of 128 to exercise padding; max_rows_tile=8 forces a
    # multi-step grid so tiling / pipelining / index_maps are exercised.
    B = 2000
    re = jax.random.normal(k_re, (B, DIM), dtype=jnp.float32)
    im = jax.random.normal(k_im, (B, DIM), dtype=jnp.float32)
    state = (re + 1j * im).astype(jnp.complex64)
    state = state / jnp.linalg.norm(state, axis=-1, keepdims=True)

    out = quantum_discriminator_forward(state, params, max_rows_tile=8)
    out = jax.block_until_ready(out)

    # Pure-JAX reference (same math, no Pallas).
    ref = _forward_xla(state, _full_unitary(params))
    assert out.shape == (B,)
    assert jnp.allclose(out, ref, atol=1e-5, rtol=1e-5), (out, ref)
    assert bool(jnp.all((out >= -1e-5) & (out <= 1.0 + 1e-5)))

    # Single-state path (matches the PyTorch forward: scalar output).
    single = quantum_discriminator_forward(state[0], params)
    single = jax.block_until_ready(single)
    assert single.shape == ()
    assert jnp.allclose(single, ref[0], atol=1e-5)

    print("KERNEL_OK")
</pallas_src>

<mosaic_0001>
module attributes {stable_mosaic.version = 11 : i64} {
  func.func @_qdisc_kernel(%arg0: i32, %arg1: memref<32xf32, #tpu.memory_space<smem>>, %arg2: memref<4x8x128xf32, #tpu.memory_space<vmem>>, %arg3: memref<4x8x128xf32, #tpu.memory_space<vmem>>, %arg4: memref<8x128xf32, #tpu.memory_space<vmem>>) attributes {dimension_semantics = [#tpu.dimension_semantics<parallel>], iteration_bounds = array<i64: 2>, scalar_prefetch = 0 : i64, scratch_operands = 0 : i64, tpu.core_type = #tpu.core_type<tc>, window_params = [{transform_indices = @transform_0, window_bounds = array<i64: 32>}, {transform_indices = @transform_1, window_bounds = array<i64: 4, 8, 128>}, {transform_indices = @transform_2, window_bounds = array<i64: 4, 8, 128>}, {transform_indices = @transform_3, window_bounds = array<i64: 8, 128>}]} {
    %c0 = arith.constant 0 : index
    %c0_0 = arith.constant 0 : index
    %c0_1 = arith.constant 0 : index
    %0 = vector.load %arg2[%c0, %c0_0, %c0_1] : memref<4x8x128xf32, #tpu.memory_space<vmem>>, vector<1x8x128xf32>
    %1 = vector.shape_cast %0 : vector<1x8x128xf32> to vector<8x128xf32>
    %c1 = arith.constant 1 : index
    %c0_2 = arith.constant 0 : index
    %c0_3 = arith.constant 0 : index
    %2 = vector.load %arg2[%c1, %c0_2, %c0_3] : memref<4x8x128xf32, #tpu.memory_space<vmem>>, vector<1x8x128xf32>
    %3 = vector.shape_cast %2 : vector<1x8x128xf32> to vector<8x128xf32>
    %c2 = arith.constant 2 : index
    %c0_4 = arith.constant 0 : index
    %c0_5 = arith.constant 0 : index
    %4 = vector.load %arg2[%c2, %c0_4, %c0_5] : memref<4x8x128xf32, #tpu.memory_space<vmem>>, vector<1x8x128xf32>
    %5 = vector.shape_cast %4 : vector<1x8x128xf32> to vector<8x128xf32>
    %c3 = arith.constant 3 : index
    %c0_6 = arith.constant 0 : index
    %c0_7 = arith.constant 0 : index
    %6 = vector.load %arg2[%c3, %c0_6, %c0_7] : memref<4x8x128xf32, #tpu.memory_space<vmem>>, vector<1x8x128xf32>
    %7 = vector.shape_cast %6 : vector<1x8x128xf32> to vector<8x128xf32>
    %c0_8 = arith.constant 0 : index
    %c0_9 = arith.constant 0 : index
    %c0_10 = arith.constant 0 : index
    %8 = vector.load %arg3[%c0_8, %c0_9, %c0_10] : memref<4x8x128xf32, #tpu.memory_space<vmem>>, vector<1x8x128xf32>
    %9 = vector.shape_cast %8 : vector<1x8x128xf32> to vector<8x128xf32>
    %c1_11 = arith.constant 1 : index
    %c0_12 = arith.constant 0 : index
    %c0_13 = arith.constant 0 : index
    %10 = vector.load %arg3[%c1_11, %c0_12, %c0_13] : memref<4x8x128xf32, #tpu.memory_space<vmem>>, vector<1x8x128xf32>
    %11 = vector.shape_cast %10 : vector<1x8x128xf32> to vector<8x128xf32>
    %c2_14 = arith.constant 2 : index
    %c0_15 = arith.constant 0 : index
    %c0_16 = arith.constant 0 : index
    %12 = vector.load %arg3[%c2_14, %c0_15, %c0_16] : memref<4x8x128xf32, #tpu.memory_space<vmem>>, vector<1x8x128xf32>
    %13 = vector.shape_cast %12 : vector<1x8x128xf32> to vector<8x128xf32>
    %c3_17 = arith.constant 3 : index
    %c0_18 = arith.constant 0 : index
    %c0_19 = arith.constant 0 : index
    %14 = vector.load %arg3[%c3_17, %c0_18, %c0_19] : memref<4x8x128xf32, #tpu.memory_space<vmem>>, vector<1x8x128xf32>
    %15 = vector.shape_cast %14 : vector<1x8x128xf32> to vector<8x128xf32>
    %cst = arith.constant 0.000000e+00 : f32
    %16 = vector.broadcast %cst : f32 to vector<8x128xf32>
    %cst_20 = arith.constant 0.000000e+00 : f32
    %17 = vector.broadcast %cst_20 : f32 to vector<8x128xf32>
    %cst_21 = arith.constant 0.000000e+00 : f32
    %18 = vector.broadcast %cst_21 : f32 to vector<8x128xf32>
    %c0_22 = arith.constant 0 : index
    %19 = memref.load %arg1[%c0_22] : memref<32xf32, #tpu.memory_space<smem>>
    %c16 = arith.constant 16 : index
    %20 = memref.load %arg1[%c16] : memref<32xf32, #tpu.memory_space<smem>>
    %21 = vector.broadcast %19 : f32 to vector<8x128xf32>
    %22 = arith.mulf %21, %1 : vector<8x128xf32>
    %23 = arith.addf %17, %22 : vector<8x128xf32>
    %24 = vector.broadcast %20 : f32 to vector<8x128xf32>
    %25 = arith.mulf %24, %9 : vector<8x128xf32>
    %26 = arith.subf %23, %25 : vector<8x128xf32>
    %27 = vector.broadcast %19 : f32 to vector<8x128xf32>
    %28 = arith.mulf %27, %9 : vector<8x128xf32>
    %29 = arith.addf %18, %28 : vector<8x128xf32>
    %30 = vector.broadcast %20 : f32 to vector<8x128xf32>
    %31 = arith.mulf %30, %1 : vector<8x128xf32>
    %32 = arith.addf %29, %31 : vector<8x128xf32>
    %c1_23 = arith.constant 1 : index
    %33 = memref.load %arg1[%c1_23] : memref<32xf32, #tpu.memory_space<smem>>
    %c17 = arith.constant 17 : index
    %34 = memref.load %arg1[%c17] : memref<32xf32, #tpu.memory_space<smem>>
    %35 = vector.broadcast %33 : f32 to vector<8x128xf32>
    %36 = arith.mulf %35, %3 : vector<8x128xf32>
    %37 = arith.addf %26, %36 : vector<8x128xf32>
    %38 = vector.broadcast %34 : f32 to vector<8x128xf32>
    %39 = arith.mulf %38, %11 : vector<8x128xf32>
    %40 = arith.subf %37, %39 : vector<8x128xf32>
    %41 = vector.broadcast %33 : f32 to vector<8x128xf32>
    %42 = arith.mulf %41, %11 : vector<8x128xf32>
    %43 = arith.addf %32, %42 : vector<8x128xf32>
    %44 = vector.broadcast %34 : f32 to vector<8x128xf32>
    %45 = arith.mulf %44, %3 : vector<8x128xf32>
    %46 = arith.addf %43, %45 : vector<8x128xf32>
    %c2_24 = arith.constant 2 : index
    %47 = memref.load %arg1[%c2_24] : memref<32xf32, #tpu.memory_space<smem>>
    %c18 = arith.constant 18 : index
    %48 = memref.load %arg1[%c18] : memref<32xf32, #tpu.memory_space<smem>>
    %49 = vector.broadcast %47 : f32 to vector<8x128xf32>
    %50 = arith.mulf %49, %5 : vector<8x128xf32>
    %51 = arith.addf %40, %50 : vector<8x128xf32>
    %52 = vector.broadcast %48 : f32 to vector<8x128xf32>
    %53 = arith.mulf %52, %13 : vector<8x128xf32>
    %54 = arith.subf %51, %53 : vector<8x128xf32>
    %55 = vector.broadcast %47 : f32 to vector<8x128xf32>
    %56 = arith.mulf %55, %13 : vector<8x128xf32>
    %57 = arith.addf %46, %56 : vector<8x128xf32>
    %58 = vector.broadcast %48 : f32 to vector<8x128xf32>
    %59 = arith.mulf %58, %5 : vector<8x128xf32>
    %60 = arith.addf %57, %59 : vector<8x128xf32>
    %c3_25 = arith.constant 3 : index
    %61 = memref.load %arg1[%c3_25] : memref<32xf32, #tpu.memory_space<smem>>
    %c19 = arith.constant 19 : index
    %62 = memref.load %arg1[%c19] : memref<32xf32, #tpu.memory_space<smem>>
    %63 = vector.broadcast %61 : f32 to vector<8x128xf32>
    %64 = arith.mulf %63, %7 : vector<8x128xf32>
    %65 = arith.addf %54, %64 : vector<8x128xf32>
    %66 = vector.broadcast %62 : f32 to vector<8x128xf32>
    %67 = arith.mulf %66, %15 : vector<8x128xf32>
    %68 = arith.subf %65, %67 : vector<8x128xf32>
    %69 = vector.broadcast %61 : f32 to vector<8x128xf32>
    %70 = arith.mulf %69, %15 : vector<8x128xf32>
    %71 = arith.addf %60, %70 : vector<8x128xf32>
    %72 = vector.broadcast %62 : f32 to vector<8x128xf32>
    %73 = arith.mulf %72, %7 : vector<8x128xf32>
    %74 = arith.addf %71, %73 : vector<8x128xf32>
    %75 = arith.mulf %68, %68 : vector<8x128xf32>
    %76 = arith.mulf %74, %74 : vector<8x128xf32>
    %77 = arith.addf %75, %76 : vector<8x128xf32>
    %78 = arith.addf %16, %77 : vector<8x128xf32>
    %cst_26 = arith.constant 0.000000e+00 : f32
    %79 = vector.broadcast %cst_26 : f32 to vector<8x128xf32>
    %cst_27 = arith.constant 0.000000e+00 : f32
    %80 = vector.broadcast %cst_27 : f32 to vector<8x128xf32>
    %c4 = arith.constant 4 : index
    %81 = memref.load %arg1[%c4] : memref<32xf32, #tpu.memory_space<smem>>
    %c20 = arith.constant 20 : index
    %82 = memref.load %arg1[%c20] : memref<32xf32, #tpu.memory_space<smem>>
    %83 = vector.broadcast %81 : f32 to vector<8x128xf32>
    %84 = arith.mulf %83, %1 : vector<8x128xf32>
    %85 = arith.addf %79, %84 : vector<8x128xf32>
    %86 = vector.broadcast %82 : f32 to vector<8x128xf32>
    %87 = arith.mulf %86, %9 : vector<8x128xf32>
    %88 = arith.subf %85, %87 : vector<8x128xf32>
    %89 = vector.broadcast %81 : f32 to vector<8x128xf32>
    %90 = arith.mulf %89, %9 : vector<8x128xf32>
    %91 = arith.addf %80, %90 : vector<8x128xf32>
    %92 = vector.broadcast %82 : f32 to vector<8x128xf32>
    %93 = arith.mulf %92, %1 : vector<8x128xf32>
    %94 = arith.addf %91, %93 : vector<8x128xf32>
    %c5 = arith.constant 5 : index
    %95 = memref.load %arg1[%c5] : memref<32xf32, #tpu.memory_space<smem>>
    %c21 = arith.constant 21 : index
    %96 = memref.load %arg1[%c21] : memref<32xf32, #tpu.memory_space<smem>>
    %97 = vector.broadcast %95 : f32 to vector<8x128xf32>
    %98 = arith.mulf %97, %3 : vector<8x128xf32>
    %99 = arith.addf %88, %98 : vector<8x128xf32>
    %100 = vector.broadcast %96 : f32 to vector<8x128xf32>
    %101 = arith.mulf %100, %11 : vector<8x128xf32>
    %102 = arith.subf %99, %101 : vector<8x128xf32>
    %103 = vector.broadcast %95 : f32 to vector<8x128xf32>
    %104 = arith.mulf %103, %11 : vector<8x128xf32>
    %105 = arith.addf %94, %104 : vector<8x128xf32>
    %106 = vector.broadcast %96 : f32 to vector<8x128xf32>
    %107 = arith.mulf %106, %3 : vector<8x128xf32>
    %108 = arith.addf %105, %107 : vector<8x128xf32>
    %c6 = arith.constant 6 : index
    %109 = memref.load %arg1[%c6] : memref<32xf32, #tpu.memory_space<smem>>
    %c22 = arith.constant 22 : index
    %110 = memref.load %arg1[%c22] : memref<32xf32, #tpu.memory_space<smem>>
    %111 = vector.broadcast %109 : f32 to vector<8x128xf32>
    %112 = arith.mulf %111, %5 : vector<8x128xf32>
    %113 = arith.addf %102, %112 : vector<8x128xf32>
    %114 = vector.broadcast %110 : f32 to vector<8x128xf32>
    %115 = arith.mulf %114, %13 : vector<8x128xf32>
    %116 = arith.subf %113, %115 : vector<8x128xf32>
    %117 = vector.broadcast %109 : f32 to vector<8x128xf32>
    %118 = arith.mulf %117, %13 : vector<8x128xf32>
    %119 = arith.addf %108, %118 : vector<8x128xf32>
    %120 = vector.broadcast %110 : f32 to vector<8x128xf32>
    %121 = arith.mulf %120, %5 : vector<8x128xf32>
    %122 = arith.addf %119, %121 : vector<8x128xf32>
    %c7 = arith.constant 7 : index
    %123 = memref.load %arg1[%c7] : memref<32xf32, #tpu.memory_space<smem>>
    %c23 = arith.constant 23 : index
    %124 = memref.load %arg1[%c23] : memref<32xf32, #tpu.memory_space<smem>>
    %125 = vector.broadcast %123 : f32 to vector<8x128xf32>
    %126 = arith.mulf %125, %7 : vector<8x128xf32>
    %127 = arith.addf %116, %126 : vector<8x128xf32>
    %128 = vector.broadcast %124 : f32 to vector<8x128xf32>
    %129 = arith.mulf %128, %15 : vector<8x128xf32>
    %130 = arith.subf %127, %129 : vector<8x128xf32>
    %131 = vector.broadcast %123 : f32 to vector<8x128xf32>
    %132 = arith.mulf %131, %15 : vector<8x128xf32>
    %133 = arith.addf %122, %132 : vector<8x128xf32>
    %134 = vector.broadcast %124 : f32 to vector<8x128xf32>
    %135 = arith.mulf %134, %7 : vector<8x128xf32>
    %136 = arith.addf %133, %135 : vector<8x128xf32>
    %137 = arith.mulf %130, %130 : vector<8x128xf32>
    %138 = arith.mulf %136, %136 : vector<8x128xf32>
    %139 = arith.addf %137, %138 : vector<8x128xf32>
    %140 = arith.addf %78, %139 : vector<8x128xf32>
    %cst_28 = arith.constant 0.000000e+00 : f32
    %141 = vector.broadcast %cst_28 : f32 to vector<8x128xf32>
    %cst_29 = arith.constant 0.000000e+00 : f32
    %142 = vector.broadcast %cst_29 : f32 to vector<8x128xf32>
    %c8 = arith.constant 8 : index
    %143 = memref.load %arg1[%c8] : memref<32xf32, #tpu.memory_space<smem>>
    %c24 = arith.constant 24 : index
    %144 = memref.load %arg1[%c24] : memref<32xf32, #tpu.memory_space<smem>>
    %145 = vector.broadcast %143 : f32 to vector<8x128xf32>
    %146 = arith.mulf %145, %1 : vector<8x128xf32>
    %147 = arith.addf %141, %146 : vector<8x128xf32>
    %148 = vector.broadcast %144 : f32 to vector<8x128xf32>
    %149 = arith.mulf %148, %9 : vector<8x128xf32>
    %150 = arith.subf %147, %149 : vector<8x128xf32>
    %151 = vector.broadcast %143 : f32 to vector<8x128xf32>
    %152 = arith.mulf %151, %9 : vector<8x128xf32>
    %153 = arith.addf %142, %152 : vector<8x128xf32>
    %154 = vector.broadcast %144 : f32 to vector<8x128xf32>
    %155 = arith.mulf %154, %1 : vector<8x128xf32>
    %156 = arith.addf %153, %155 : vector<8x128xf32>
    %c9 = arith.constant 9 : index
    %157 = memref.load %arg1[%c9] : memref<32xf32, #tpu.memory_space<smem>>
    %c25 = arith.constant 25 : index
    %158 = memref.load %arg1[%c25] : memref<32xf32, #tpu.memory_space<smem>>
    %159 = vector.broadcast %157 : f32 to vector<8x128xf32>
    %160 = arith.mulf %159, %3 : vector<8x128xf32>
    %161 = arith.addf %150, %160 : vector<8x128xf32>
    %162 = vector.broadcast %158 : f32 to vector<8x128xf32>
    %163 = arith.mulf %162, %11 : vector<8x128xf32>
    %164 = arith.subf %161, %163 : vector<8x128xf32>
    %165 = vector.broadcast %157 : f32 to vector<8x128xf32>
    %166 = arith.mulf %165, %11 : vector<8x128xf32>
    %167 = arith.addf %156, %166 : vector<8x128xf32>
    %168 = vector.broadcast %158 : f32 to vector<8x128xf32>
    %169 = arith.mulf %168, %3 : vector<8x128xf32>
    %170 = arith.addf %167, %169 : vector<8x128xf32>
    %c10 = arith.constant 10 : index
    %171 = memref.load %arg1[%c10] : memref<32xf32, #tpu.memory_space<smem>>
    %c26 = arith.constant 26 : index
    %172 = memref.load %arg1[%c26] : memref<32xf32, #tpu.memory_space<smem>>
    %173 = vector.broadcast %171 : f32 to vector<8x128xf32>
    %174 = arith.mulf %173, %5 : vector<8x128xf32>
    %175 = arith.addf %164, %174 : vector<8x128xf32>
    %176 = vector.broadcast %172 : f32 to vector<8x128xf32>
    %177 = arith.mulf %176, %13 : vector<8x128xf32>
    %178 = arith.subf %175, %177 : vector<8x128xf32>
    %179 = vector.broadcast %171 : f32 to vector<8x128xf32>
    %180 = arith.mulf %179, %13 : vector<8x128xf32>
    %181 = arith.addf %170, %180 : vector<8x128xf32>
    %182 = vector.broadcast %172 : f32 to vector<8x128xf32>
    %183 = arith.mulf %182, %5 : vector<8x128xf32>
    %184 = arith.addf %181, %183 : vector<8x128xf32>
    %c11 = arith.constant 11 : index
    %185 = memref.load %arg1[%c11] : memref<32xf32, #tpu.memory_space<smem>>
    %c27 = arith.constant 27 : index
    %186 = memref.load %arg1[%c27] : memref<32xf32, #tpu.memory_space<smem>>
    %187 = vector.broadcast %185 : f32 to vector<8x128xf32>
    %188 = arith.mulf %187, %7 : vector<8x128xf32>
    %189 = arith.addf %178, %188 : vector<8x128xf32>
    %190 = vector.broadcast %186 : f32 to vector<8x128xf32>
    %191 = arith.mulf %190, %15 : vector<8x128xf32>
    %192 = arith.subf %189, %191 : vector<8x128xf32>
    %193 = vector.broadcast %185 : f32 to vector<8x128xf32>
    %194 = arith.mulf %193, %15 : vector<8x128xf32>
    %195 = arith.addf %184, %194 : vector<8x128xf32>
    %196 = vector.broadcast %186 : f32 to vector<8x128xf32>
    %197 = arith.mulf %196, %7 : vector<8x128xf32>
    %198 = arith.addf %195, %197 : vector<8x128xf32>
    %199 = arith.mulf %192, %192 : vector<8x128xf32>
    %200 = arith.mulf %198, %198 : vector<8x128xf32>
    %201 = arith.addf %199, %200 : vector<8x128xf32>
    %202 = arith.subf %140, %201 : vector<8x128xf32>
    %cst_30 = arith.constant 0.000000e+00 : f32
    %203 = vector.broadcast %cst_30 : f32 to vector<8x128xf32>
    %cst_31 = arith.constant 0.000000e+00 : f32
    %204 = vector.broadcast %cst_31 : f32 to vector<8x128xf32>
    %c12 = arith.constant 12 : index
    %205 = memref.load %arg1[%c12] : memref<32xf32, #tpu.memory_space<smem>>
    %c28 = arith.constant 28 : index
    %206 = memref.load %arg1[%c28] : memref<32xf32, #tpu.memory_space<smem>>
    %207 = vector.broadcast %205 : f32 to vector<8x128xf32>
    %208 = arith.mulf %207, %1 : vector<8x128xf32>
    %209 = arith.addf %203, %208 : vector<8x128xf32>
    %210 = vector.broadcast %206 : f32 to vector<8x128xf32>
    %211 = arith.mulf %210, %9 : vector<8x128xf32>
    %212 = arith.subf %209, %211 : vector<8x128xf32>
    %213 = vector.broadcast %205 : f32 to vector<8x128xf32>
    %214 = arith.mulf %213, %9 : vector<8x128xf32>
    %215 = arith.addf %204, %214 : vector<8x128xf32>
    %216 = vector.broadcast %206 : f32 to vector<8x128xf32>
    %217 = arith.mulf %216, %1 : vector<8x128xf32>
    %218 = arith.addf %215, %217 : vector<8x128xf32>
    %c13 = arith.constant 13 : index
    %219 = memref.load %arg1[%c13] : memref<32xf32, #tpu.memory_space<smem>>
    %c29 = arith.constant 29 : index
    %220 = memref.load %arg1[%c29] : memref<32xf32, #tpu.memory_space<smem>>
    %221 = vector.broadcast %219 : f32 to vector<8x128xf32>
    %222 = arith.mulf %221, %3 : vector<8x128xf32>
    %223 = arith.addf %212, %222 : vector<8x128xf32>
    %224 = vector.broadcast %220 : f32 to vector<8x128xf32>
    %225 = arith.mulf %224, %11 : vector<8x128xf32>
    %226 = arith.subf %223, %225 : vector<8x128xf32>
    %227 = vector.broadcast %219 : f32 to vector<8x128xf32>
    %228 = arith.mulf %227, %11 : vector<8x128xf32>
    %229 = arith.addf %218, %228 : vector<8x128xf32>
    %230 = vector.broadcast %220 : f32 to vector<8x128xf32>
    %231 = arith.mulf %230, %3 : vector<8x128xf32>
    %232 = arith.addf %229, %231 : vector<8x128xf32>
    %c14 = arith.constant 14 : index
    %233 = memref.load %arg1[%c14] : memref<32xf32, #tpu.memory_space<smem>>
    %c30 = arith.constant 30 : index
    %234 = memref.load %arg1[%c30] : memref<32xf32, #tpu.memory_space<smem>>
    %235 = vector.broadcast %233 : f32 to vector<8x128xf32>
    %236 = arith.mulf %235, %5 : vector<8x128xf32>
    %237 = arith.addf %226, %236 : vector<8x128xf32>
    %238 = vector.broadcast %234 : f32 to vector<8x128xf32>
    %239 = arith.mulf %238, %13 : vector<8x128xf32>
    %240 = arith.subf %237, %239 : vector<8x128xf32>
    %241 = vector.broadcast %233 : f32 to vector<8x128xf32>
    %242 = arith.mulf %241, %13 : vector<8x128xf32>
    %243 = arith.addf %232, %242 : vector<8x128xf32>
    %244 = vector.broadcast %234 : f32 to vector<8x128xf32>
    %245 = arith.mulf %244, %5 : vector<8x128xf32>
    %246 = arith.addf %243, %245 : vector<8x128xf32>
    %c15 = arith.constant 15 : index
    %247 = memref.load %arg1[%c15] : memref<32xf32, #tpu.memory_space<smem>>
    %c31 = arith.constant 31 : index
    %248 = memref.load %arg1[%c31] : memref<32xf32, #tpu.memory_space<smem>>
    %249 = vector.broadcast %247 : f32 to vector<8x128xf32>
    %250 = arith.mulf %249, %7 : vector<8x128xf32>
    %251 = arith.addf %240, %250 : vector<8x128xf32>
    %252 = vector.broadcast %248 : f32 to vector<8x128xf32>
    %253 = arith.mulf %252, %15 : vector<8x128xf32>
    %254 = arith.subf %251, %253 : vector<8x128xf32>
    %255 = vector.broadcast %247 : f32 to vector<8x128xf32>
    %256 = arith.mulf %255, %15 : vector<8x128xf32>
    %257 = arith.addf %246, %256 : vector<8x128xf32>
    %258 = vector.broadcast %248 : f32 to vector<8x128xf32>
    %259 = arith.mulf %258, %7 : vector<8x128xf32>
    %260 = arith.addf %257, %259 : vector<8x128xf32>
    %261 = arith.mulf %254, %254 : vector<8x128xf32>
    %262 = arith.mulf %260, %260 : vector<8x128xf32>
    %263 = arith.addf %261, %262 : vector<8x128xf32>
    %264 = arith.subf %202, %263 : vector<8x128xf32>
    %cst_32 = arith.constant 1.000000e+00 : f32
    %265 = vector.broadcast %cst_32 : f32 to vector<8x128xf32>
    %266 = arith.subf %265, %264 : vector<8x128xf32>
    %cst_33 = arith.constant 5.000000e-01 : f32
    %267 = vector.broadcast %cst_33 : f32 to vector<8x128xf32>
    %268 = arith.mulf %266, %267 : vector<8x128xf32>
    %c0_34 = arith.constant 0 : index
    %c0_35 = arith.constant 0 : index
    %269 = vector.load %arg4[%c0_34, %c0_35] : memref<8x128xf32, #tpu.memory_space<vmem>>, vector<8x128xf32>
    tpu.vector_store %arg4[%c0_34, %c0_35], %268 {strides = array<i32>} : memref<8x128xf32, #tpu.memory_space<vmem>>, vector<8x128xf32>,
    return
  }
  func.func @transform_0(%arg0: i32) -> i32 {
    %c0_i32 = arith.constant 0 : i32
    %c0_i32_0 = arith.constant 0 : i32
    return %c0_i32 : i32
  }
  func.func @transform_1(%arg0: i32) -> (i32, i32, i32) {
    %c0_i32 = arith.constant 0 : i32
    %c0_i32_0 = arith.constant 0 : i32
    %c0_i32_1 = arith.constant 0 : i32
    return %c0_i32, %arg0, %c0_i32_0 : i32, i32, i32
  }
  func.func @transform_2(%arg0: i32) -> (i32, i32, i32) {
    %c0_i32 = arith.constant 0 : i32
    %c0_i32_0 = arith.constant 0 : i32
    %c0_i32_1 = arith.constant 0 : i32
    return %c0_i32, %arg0, %c0_i32_0 : i32, i32, i32
  }
  func.func @transform_3(%arg0: i32) -> (i32, i32) {
    %c0_i32 = arith.constant 0 : i32
    %c0_i32_0 = arith.constant 0 : i32
    return %arg0, %c0_i32 : i32, i32
  }
}

</mosaic_0001>

<bundles_post_ra>
// kernel: custom-call.1
= control target key start
LH: loop header
LB: loop body
LE: loop exit
PB: predicated region body
PF: predicated region fallthrough
CT: control target
= control target key end

     0   :  { %s59_s0 = inlined_call_operand.hbm [shape: c64[2000,4], index: 0, kind: input, shape index: {}]   ;;  %s60_s1 = inlined_call_operand.vmem [shape: f32[2000,4], index: 1, kind: output, shape index: {}]  }
   0x1   :  { %s2_s8 = scalar_lea.hbm %s59_s0, 1024 }
   0x2   :  { %3 = vsyncpa [#allocation0], 0  ;;  %s4_s11 = sshll.u32 %s60_s1, 4  ;;  %s34_s14 = scalar_lea.hbm %s59_s0, 2048  ;;  %s5_s11 = int_to_ptr.vmem [resolvable:$true] %s4_s11 }
   0x3   :  { %p11_p0 = scmp.ne.s32.totalorder %s2_s8, %s34_s14  ;;  %p13_p1 = scmp.lt.u32.totalorder %s2_s8, %s59_s0 }
   0x4   :  { %p14_p2 = scmp.lt.u32.totalorder %s34_s14, %s34_s14  ;;  %p16_p4 = scmp.lt.u32.totalorder %s34_s14, %s2_s8 }
   0x6   :  { %p15_p3 = por %p14_p2, %p13_p1 }
   0x8   :  { %p17_p5 = por %p16_p4, %p15_p3 }
   0xa   :  { %p18_p6 = pnand %p17_p5, %p11_p0 }
   0xc   :  { %21 = shalt.err (!%p18_p6)  }
   0xd   :  { %s22_s17 = scalar_lea.vmem %s5_s11, 1024  ;;  %p27_p8 = scmp.lt.s32.totalorder %s5_s11, %s5_s11 }
   0xe   :  { %p23_p7 = scmp.ne.s32.totalorder %s5_s11, %s22_s17  ;;  %p28_p9 = scmp.lt.s32.totalorder %s22_s17, %s22_s17 }
  0x10   :  { %p29_p10 = por %p28_p9, %p27_p8 }
  0x12   :  { %p30_p11 = pnand %p29_p10, %p23_p7 }
  0x14   :  { %33 = shalt.err (!%p30_p11)  }
  0x15   :  { %7 = dma.hbm_to_vmem [thread:$0]  %s2_s8, 1024, %s5_s11, [#allocation0] }
  0x16   :  { %35 = dma.done.wait [#allocation0], 1024  }
  0x17   :  { %36 = vsyncadd [#allocation0], 4294966272 }
  0x18   :  { %9 = vsyncpa [#allocation0], 1 }

// kernel: custom-call
= control target key start
LH: loop header
LB: loop body
LE: loop exit
PB: predicated region body
PF: predicated region fallthrough
CT: control target
= control target key end

     0   :  { %2 = vsyncpa [#allocation0], 0  ;;  %s61_s0 = inlined_call_operand.hbm [shape: c64[2000,4], index: 0, kind: input, shape index: {}]   ;;  %s62_s1 = inlined_call_operand.vmem [shape: f32[2000,4], index: 1, kind: output, shape index: {}]  }
   0x1   :  { %s3_s8 = sshll.u32 %s62_s1, 4  ;;  %s9_s11 = scalar_lea.hbm %s61_s0, 1024  ;;  %s4_s8 = int_to_ptr.vmem [resolvable:$true] %s3_s8 }
   0x2   :  { %p10_p0 = scmp.ne.s32.totalorder %s61_s0, %s9_s11  ;;  %s11_s16 = scalar_lea.hbm %s61_s0, 2048 }
   0x3   :  { %p12_p1 = scmp.lt.u32.totalorder %s11_s16, %s9_s11  ;;  %p13_p2 = scmp.lt.u32.totalorder %s9_s11, %s61_s0 }
   0x5   :  { %p14_p3 = por %p13_p2, %p12_p1 }
   0x7   :  { %p15_p4 = pnand %p14_p3, %p10_p0 }
   0x9   :  { %18 = shalt.err (!%p15_p4)  }
   0xa   :  { %s19_s1 = scalar_lea.vmem %s4_s8, 1024  ;;  %p24_p6 = scmp.lt.s32.totalorder %s4_s8, %s4_s8 }
   0xb   :  { %p20_p5 = scmp.ne.s32.totalorder %s4_s8, %s19_s1  ;;  %p25_p7 = scmp.lt.s32.totalorder %s19_s1, %s19_s1 }
   0xd   :  { %p26_p8 = por %p25_p7, %p24_p6 }
   0xf   :  { %p27_p9 = pnand %p26_p8, %p20_p5 }
  0x11   :  { %30 = shalt.err (!%p27_p9)  }
  0x12   :  { %6 = dma.hbm_to_vmem [thread:$0]  %s61_s0, 1024, %s4_s8, [#allocation0] }
  0x13   :  { %31 = dma.done.wait [#allocation0], 1024  }
  0x14   :  { %32 = vsyncadd [#allocation0], 4294966272 }
  0x15   :  { %8 = vsyncpa [#allocation0], 1 }

// kernel: quantum_discriminator_forward.1
= control target key start
LH: loop header
LB: loop body
LE: loop exit
PB: predicated region body
PF: predicated region fallthrough
CT: control target
= control target key end

     0   :  { %8 = vsyncpa [#allocation4], 0  ;;  %s1155_s0 = inlined_call_operand.vmem [shape: f32[32], index: 0, kind: input, shape index: {}]   ;;  %s1156_s1 = inlined_call_operand.vmem [shape: f32[4,16,128], index: 1, kind: input, shape index: {}]   ;;  %s1157_s2 = inlined_call_operand.vmem [shape: f32[4,16,128], index: 2, kind: input, shape index: {}]   ;;  %s1158_s3 = inlined_call_operand.hbm [shape: f32[16,128], index: 3, kind: output, shape index: {}]  }
   0x1   :  { %9 = vsyncpa [#allocation3], 0 }
   0x2   :  { %11 = vsyncpa [#allocation3 + $0x1], 0  ;;  %s838_s12 = smov 0   ;;  %s840_s13 = smov 0  }
   0x3   :  { %s842_s14 = smov 0   ;;  %s844_s15 = smov 0  }
   0x4 LB: > { %s859_s16 = sadd.s32 4294967295, %s814_s15   ;;  %s629_s17 = sadd.s32 4294967294, %s814_s15   ;;  %s814_s15 = sphi %s844_s15, %s1169_s15   ;;  %s810_s14 = sphi %s842_s14, %s1168_s14   ;;  %s806_s13 = sphi %s840_s13, %s1167_s13   ;;  %s802_s12 = sphi %s838_s12, %s1166_s12  }
   0x5   : > { %s863_s18 = sadd.s32 1, %s814_s15   ;;  %s45_s19 = sadd.s32 1, %s810_s14 }
   0x6   : > { %s42_s20 = ssub.s32 %s814_s15, %s863_s18  ;;  %p52_p0 = scmp.ne.s32.totalorder %s810_s14, %s806_s13 }
   0x7   : > { %p43_p1 = scmp.eq.s32.totalorder %s42_s20, 0  ;;  %p53_p2 = scmp.eq.s32.totalorder %s814_s15, 0 }
   0x8   : > { %p108_p3 = scmp.eq.s32.totalorder %s859_s16, 1  ;;  %p113_p4 = scmp.ne.s32.totalorder %s806_s13, %s802_s12 }
   0x9   : > { %s875_s21 = scalar_select %p43_p1, %s810_s14, %s45_s19  }
   0xa   : > { %p877_p5 = por %p53_p2, %p52_p0  ;;  %p881_p6 = por %p108_p3, %p52_p0 }
   0xb   : > { %p114_p7 = scmp.eq.s32.totalorder %s629_s17, 1  ;;  %p630_p8 = scmp.ge.s32.totalorder %s814_s15, 1 }
   0xc   : > { %s1161_s23 = scalar_select %p881_p6, 1, 0 }
   0xd   : > { %p121_p9 = scmp.lt.s32.totalorder %s814_s15, 3  ;;  %p887_p10 = por %p114_p7, %p113_p4 }
   0xe   : > { %p697_p11 = scmp.eq.s32.totalorder %s859_s16, 0  ;;  %s134_s28 = sshll.u32 %s1155_s0, 4  ;;  %s135_s28 = int_to_ptr.vmem [resolvable:$true] %s134_s28 }
   0xf   : > { %s1162_s24 = scalar_select %p887_p10, 1, 0 }
  0x10   : > { %p892_p12 = pnand %p630_p8, %p121_p9  ;;  %s733_s29 = scalar_lea.vmem %s135_s28, 16 }
  0x11   : > { %p734_p1 = scmp.ne.s32.totalorder %s135_s28, %s733_s29  ;;  %p741_p7 = scmp.lt.s32.totalorder %s135_s28, %s135_s28 }
  0x12   : > { %p689_p13 = pneg %p892_p12  ;;  %p742_p8 = scmp.lt.s32.totalorder %s733_s29, %s733_s29 }
  0x14   : > { %p690_p0 = pnand %p697_p11, %p689_p13  ;;  %p743_p9 = por %p742_p8, %p741_p7 }
  0x16   : > { %p735_p2 = pneg %p690_p0 }
  0x18   : > { %p736_p3 = pnand %p735_p2, %p734_p1 }
  0x1a   : > { %p737_p4 = pneg %p736_p3 }
  0x1c   : > { %p744_p10 = pnand %p743_p9, %p737_p4 }
  0x1e   : > { %747 = shalt.err (!%p744_p10)
}
  0x1f   : > { %s816_s30 = smov [#allocation2]   ;;  %p632_p6 = scmp.ge.s32.totalorder %s814_s15, 2 }
  0x20   : > { %692 = dma.vmem_to_smem (!%p690_p0), %s135_s28, 16, %s816_s30, [#allocation4]  }
  0x21   : > { %141 = sbr.rel (%p632_p6) target bundleno = 54 (0x36), region = 20 }
  0x28   : > { %144 = sbr.rel (!%p877_p5) target bundleno = 47 (0x2f), region = 24  ;;  %s146_s4 = sand.u32 (%p877_p5), 1, %s810_s14  }
  0x29   : > { %s634_s5 = sshll.u32 (%p877_p5), %s814_s15, 3  ;;  %s633_s6 = sshll.u32 (%p877_p5), %s146_s4, 5 }
  0x2a   : > { %s150_s9 = scalar_lea.vmem (%p877_p5), %s1156_s1, %s634_s5  ;;  %s148_s10 = scalar_lea.vmem (%p877_p5), [#allocation5], %s633_s6 }
  0x2b   : > { %v184_v0 = vld [vmem:[%s150_s9] sm:$0xff] (%p877_p5)  ;;  %v186_v1 = vld [vmem:[%s150_s9 + $0x10] sm:$0xff] (%p877_p5) }
  0x2c   : > { %v188_v2 = vld [vmem:[%s150_s9 + $0x20] sm:$0xff] (%p877_p5)  ;;  %185 = vst [vmem:[%s148_s10] sm:$0xff] (%p877_p5), %v184_v0  ;;  %187 = vst [vmem:[%s148_s10 + $0x8] sm:$0xff] (%p877_p5), %v186_v1  ;;  %v190_v3 = vld [vmem:[%s150_s9 + $0x30] sm:$0xff] (%p877_p5) }
  0x2d   : > { %189 = vst [vmem:[%s148_s10 + $0x10] sm:$0xff] (%p877_p5), %v188_v2  ;;  %191 = vst [vmem:[%s148_s10 + $0x18] sm:$0xff] (%p877_p5), %v190_v3 }
  0x2f PF: > { %197 = sbr.rel (!%p877_p5) target bundleno = 54 (0x36), region = 62  ;;  %s199_s11 = sand.u32 (%p877_p5), 1, %s810_s14  }
  0x30   : > { %s636_s17 = sshll.u32 (%p877_p5), %s814_s15, 3  ;;  %s635_s19 = sshll.u32 (%p877_p5), %s199_s11, 5 }
  0x31   : > { %s203_s27 = scalar_lea.vmem (%p877_p5), %s1157_s2, %s636_s17  ;;  %s201_s28 = scalar_lea.vmem (%p877_p5), [#allocation6], %s635_s19 }
  0x32   : > { %v237_v4 = vld [vmem:[%s203_s27] sm:$0xff] (%p877_p5)  ;;  %v239_v5 = vld [vmem:[%s203_s27 + $0x10] sm:$0xff] (%p877_p5) }
  0x33   : > { %v241_v6 = vld [vmem:[%s203_s27 + $0x20] sm:$0xff] (%p877_p5)  ;;  %238 = vst [vmem:[%s201_s28] sm:$0xff] (%p877_p5), %v237_v4  ;;  %240 = vst [vmem:[%s201_s28 + $0x8] sm:$0xff] (%p877_p5), %v239_v5  ;;  %v243_v7 = vld [vmem:[%s203_s27 + $0x30] sm:$0xff] (%p877_p5) }
  0x34   : > { %242 = vst [vmem:[%s201_s28 + $0x10] sm:$0xff] (%p877_p5), %v241_v6  ;;  %244 = vst [vmem:[%s201_s28 + $0x18] sm:$0xff] (%p877_p5), %v243_v7 }
  0x36 PF: > { %253 = sbr.rel (%p892_p12) target bundleno = 142 (0x8e), region = 100 }
  0x3d   : > { %793 = dma.done.wait (%p697_p11), [#allocation4], 16  }
  0x3e   : > { %795 = vsyncadd (%p697_p11), [#allocation4], 4294967280  ;;  %s927_s22 = sand.u32 1, %s806_s13  }
  0x3f   : > { %s639_s29 = sshll.u32 %s927_s22, 5 }
  0x40   : > { %s930_s30 = scalar_lea.vmem [#allocation5], %s639_s29  ;;  %s932_s4 = scalar_lea.vmem [#allocation6], %s639_s29 }
  0x41   : > { %273 = sfence }
  0x42   : > { %s309_s5 = sld [smem:[#allocation2]]  ;;  %s649_s6 = sld [smem:[#allocation2 + $0x1]]  ;;  %v939_v8 = vld [vmem:[%s930_s30] sm:$0xff]  ;;  %v949_v10 = vld [vmem:[%s930_s30 + $0x8] sm:$0xff]  ;;  %v961_v16 = vld [vmem:[%s930_s30 + $0x10] sm:$0xff] }
  0x43   : > { %s648_s25 = sld [smem:[#allocation2 + $0x10]]  ;;  %s650_s7 = sld [smem:[#allocation2 + $0x11]]  ;;  %v942_v9 = vld [vmem:[%s932_s4] sm:$0xff]  ;;  %v952_v11 = vld [vmem:[%s932_s4 + $0x8] sm:$0xff]  ;;  %v964_v17 = vld [vmem:[%s932_s4 + $0x10] sm:$0xff] }
  0x44   : > { %s934_s8 = sld [smem:[#allocation2 + $0x2]]  ;;  %s944_s10 = sld [smem:[#allocation2 + $0x3]]  ;;  %v977_v26 = vld [vmem:[%s930_s30 + $0x18] sm:$0xff] }
  0x45   : > { %s936_s9 = sld [smem:[#allocation2 + $0x12]]  ;;  %s946_s11 = sld [smem:[#allocation2 + $0x13]]  ;;  %v980_v27 = vld [vmem:[%s932_s4 + $0x18] sm:$0xff] }
  0x46   : > { %s954_s17 = sld [smem:[#allocation2 + $0x4]]  ;;  %s968_s20 = sld [smem:[#allocation2 + $0x5]] }
  0x47   : > { %s956_s19 = sld [smem:[#allocation2 + $0x14]]  ;;  %s970_s26 = sld [smem:[#allocation2 + $0x15]] }
  0x48   : > { %v311_v12 = vstv %s309_s5  ;;  %v323_v20 = vstv %s649_s6  ;;  %s984_s27 = sld [smem:[#allocation2 + $0x6]]  ;;  %s992_s29 = sld [smem:[#allocation2 + $0x7]] }
  0x49   : > { %v312_v13 = vmul.f32 %v311_v12, %v939_v8  ;;  %v314_v14 = vstv %s648_s25  ;;  %v317_v15 = vmul.f32 %v311_v12, %v942_v9  ;;  %v326_v21 = vstv %s650_s7  ;;  %s990_s28 = sld [smem:[#allocation2 + $0x16]]  ;;  %s1006_s30 = sld [smem:[#allocation2 + $0x17]] }
  0x4a   : > { %v315_v18 = vmul.f32 %v314_v14, %v942_v9  ;;  %v319_v19 = vmul.f32 %v314_v14, %v939_v8  ;;  %v324_v22 = vmul.f32 %v949_v10, %v323_v20  ;;  %v327_v23 = vmul.f32 %v952_v11, %v326_v21  ;;  %s1008_s4 = sld [smem:[#allocation2 + $0x8]]  ;;  %s1021_s25 = sld [smem:[#allocation2 + $0x9]] }
  0x4b   : > { %v329_v24 = vmul.f32 %v952_v11, %v323_v20  ;;  %v331_v25 = vmul.f32 %v949_v10, %v326_v21  ;;  %v335_v30 = vstv %s934_s8  ;;  %v338_v31 = vstv %s936_s9  ;;  %s1014_s5 = sld [smem:[#allocation2 + $0x18]]  ;;  %s1023_s6 = sld [smem:[#allocation2 + $0x19]] }
  0x4c   : > { %v316_v28 = vsub.f32 %v312_v13, %v315_v18  ;;  %v320_v29 = vadd.f32 %v319_v19, %v317_v15  ;;  %v336_v32 = vmul.f32 %v961_v16, %v335_v30  ;;  %v339_v33 = vmul.f32 %v964_v17, %v338_v31  ;;  %s1029_s7 = sld [smem:[#allocation2 + $0xa]]  ;;  %s1037_s9 = sld [smem:[#allocation2 + $0xb]] }
  0x4d   : > { %v341_v34 = vmul.f32 %v964_v17, %v335_v30  ;;  %v343_v35 = vmul.f32 %v961_v16, %v338_v31  ;;  %v347_v38 = vstv %s944_s10  ;;  %v350_v39 = vstv %s946_s11  ;;  %s1031_s8 = sld [smem:[#allocation2 + $0x1a]]  ;;  %s1042_s10 = sld [smem:[#allocation2 + $0x1b]] }
  0x4e   : > { %v325_v36 = vadd.f32 %v324_v22, %v316_v28  ;;  %v330_v37 = vadd.f32 %v329_v24, %v320_v29  ;;  %v348_v40 = vmul.f32 %v977_v26, %v347_v38  ;;  %v351_v41 = vmul.f32 %v980_v27, %v350_v39  ;;  %s1044_s11 = sld [smem:[#allocation2 + $0xc]]  ;;  %p1164_p10 = scmp.ne.s32.totalorder %s1161_s23, 0 }
  0x4f   : > { %v353_v42 = vmul.f32 %v980_v27, %v347_v38  ;;  %v355_v43 = vmul.f32 %v977_v26, %v350_v39  ;;  %v363_v46 = vstv %s954_s17  ;;  %v366_v47 = vstv %s956_s19  ;;  %s1054_s17 = sld [smem:[#allocation2 + $0x1c]]  ;;  %s1058_s19 = sld [smem:[#allocation2 + $0xd]] }
  0x50   : > { %v328_v44 = vsub.f32 %v325_v36, %v327_v23  ;;  %v332_v45 = vadd.f32 %v331_v25, %v330_v37  ;;  %v364_v48 = vmul.f32 %v363_v46, %v939_v8  ;;  %v367_v49 = vmul.f32 %v366_v47, %v942_v9 }
  0x51   : > { %v369_v50 = vmul.f32 %v363_v46, %v942_v9  ;;  %v371_v51 = vmul.f32 %v366_v47, %v939_v8  ;;  %v375_v54 = vstv %s968_s20  ;;  %v378_v55 = vstv %s970_s26  ;;  %s1062_s20 = sld [smem:[#allocation2 + $0x1d]]  ;;  %s1068_s26 = sld [smem:[#allocation2 + $0xe]] }
  0x52   : > { %v337_v52 = vadd.f32 %v336_v32, %v328_v44  ;;  %v342_v53 = vadd.f32 %v341_v34, %v332_v45  ;;  %v368_v56 = vsub.f32 %v364_v48, %v367_v49  ;;  %v376_v58 = vmul.f32 %v949_v10, %v375_v54 }
  0x53   : > { %v372_v57 = vadd.f32 %v371_v51, %v369_v50  ;;  %v379_v59 = vmul.f32 %v952_v11, %v378_v55  ;;  %v381_v62 = vmul.f32 %v952_v11, %v375_v54  ;;  %v383_v63 = vmul.f32 %v949_v10, %v378_v55 }
  0x54   : > { %v340_v60 = vsub.f32 %v337_v52, %v339_v33  ;;  %v344_v61 = vadd.f32 %v343_v35, %v342_v53  ;;  %v377_v0 = vadd.f32 %v376_v58, %v368_v56  ;;  %v387_v1 = vstv %s984_s27  ;;  %s1070_s27 = sld [smem:[#allocation2 + $0x1e]] }
  0x55   : > { %v390_v2 = vstv %s990_s28  ;;  %v399_v3 = vstv %s992_s29  ;;  %v382_v6 = vadd.f32 %v381_v62, %v372_v57  ;;  %v388_v7 = vmul.f32 %v961_v16, %v387_v1  ;;  %s1079_s28 = sld [smem:[#allocation2 + $0xf]] }
  0x56   : > { %v349_v4 = vadd.f32 %v348_v40, %v340_v60  ;;  %v354_v5 = vadd.f32 %v353_v42, %v344_v61  ;;  %v380_v12 = vsub.f32 %v377_v0, %v379_v59  ;;  %v391_v13 = vmul.f32 %v964_v17, %v390_v2  ;;  %s1084_s29 = sld [smem:[#allocation2 + $0x1f]] }
  0x57   : > { %v393_v14 = vmul.f32 %v964_v17, %v387_v1  ;;  %v384_v15 = vadd.f32 %v383_v63, %v382_v6  ;;  %v395_v18 = vmul.f32 %v961_v16, %v390_v2  ;;  %v400_v20 = vmul.f32 %v977_v26, %v399_v3 }
  0x58   : > { %v389_v19 = vadd.f32 %v388_v7, %v380_v12  ;;  %v402_v21 = vstv %s1006_s30  ;;  %v415_v22 = vstv %s1008_s4  ;;  %v352_v23 = vsub.f32 %v349_v4, %v351_v41  ;;  %s641_s30 = sshll.u32 %s927_s22, 3  ;;  %s680_s4 = sshll.u32 %s859_s16, 7 }
  0x59   : > { %v356_v24 = vadd.f32 %v355_v43, %v354_v5  ;;  %v394_v25 = vadd.f32 %v393_v14, %v384_v15  ;;  %v405_v28 = vmul.f32 %v980_v27, %v399_v3  ;;  %v403_v30 = vmul.f32 %v980_v27, %v402_v21  ;;  %s817_s16 = smov [#allocation7]  }
  0x5a   : > { %v392_v29 = vsub.f32 %v389_v19, %v391_v13  ;;  %v416_v31 = vmul.f32 %v415_v22, %v939_v8  ;;  %v418_v32 = vstv %s1014_s5  ;;  %v407_v34 = vmul.f32 %v977_v26, %v402_v21  ;;  %s294_s5 = scalar_lea.vmem [#allocation7], %s641_s30 }
  0x5b   : > { %v396_v33 = vadd.f32 %v395_v18, %v394_v25  ;;  %v419_v35 = vmul.f32 %v418_v32, %v942_v9  ;;  %v421_v36 = vmul.f32 %v415_v22, %v942_v9  ;;  %v423_v38 = vmul.f32 %v418_v32, %v939_v8 }
  0x5c   : > { %v401_v37 = vadd.f32 %v400_v20, %v392_v29  ;;  %v427_v39 = vstv %s1021_s25  ;;  %v430_v40 = vstv %s1023_s6  ;;  %v439_v51 = vstv %s1029_s7  ;;  %s534_s25 = sshll.u32 %s294_s5, 4  ;;  %s1113_s25 = int_to_ptr.vmem [resolvable:$true] %s534_s25 }
  0x5d   : > { %v406_v41 = vadd.f32 %v405_v28, %v396_v33  ;;  %v420_v42 = vsub.f32 %v416_v31, %v419_v35  ;;  %v428_v43 = vmul.f32 %v949_v10, %v427_v39  ;;  %v431_v44 = vmul.f32 %v952_v11, %v430_v40 }
  0x5e   : > { %v404_v45 = vsub.f32 %v401_v37, %v403_v30  ;;  %v424_v46 = vadd.f32 %v423_v38, %v421_v36  ;;  %v433_v47 = vmul.f32 %v952_v11, %v427_v39  ;;  %v435_v48 = vmul.f32 %v949_v10, %v430_v40 }
  0x5f   : > { %v408_v49 = vadd.f32 %v407_v34, %v406_v41  ;;  %v429_v50 = vadd.f32 %v428_v43, %v420_v42  ;;  %v442_v52 = vstv %s1031_s8  ;;  %v357_v53 = vmul.f32 %v352_v23, %v352_v23  ;;  %s1111_s8 = scalar_lea.hbm %s1158_s3, %s680_s4 }
  0x60   : > { %v358_v54 = vmul.f32 %v356_v24, %v356_v24  ;;  %v434_v55 = vadd.f32 %v433_v47, %v424_v46  ;;  %v440_v56 = vmul.f32 %v961_v16, %v439_v51  ;;  %v443_v58 = vmul.f32 %v964_v17, %v442_v52 }
  0x61   : > { %v432_v57 = vsub.f32 %v429_v50, %v431_v44  ;;  %v445_v59 = vmul.f32 %v964_v17, %v439_v51  ;;  %v447_v60 = vmul.f32 %v961_v16, %v442_v52  ;;  %v451_v62 = vstv %s1037_s9  ;;  %s521_s9 = scalar_lea.sflag [#allocation3], %s927_s22 }
  0x62   : > { %v436_v61 = vadd.f32 %v435_v48, %v434_v55  ;;  %v454_v63 = vstv %s1042_s10  ;;  %v467_v0 = vstv %s1044_s11  ;;  %v409_v1 = vmul.f32 %v404_v45, %v404_v45  ;;  %s748_s10 = scalar_lea.vmem %s1113_s25, 128  ;;  %s752_s11 = sshll.u32 %s817_s16, 4  ;;  %s753_s11 = int_to_ptr.vmem [resolvable:$false] %s752_s11 }
  0x63   : > { %v410_v2 = vmul.f32 %v408_v49, %v408_v49  ;;  %v441_v3 = vadd.f32 %v440_v56, %v432_v57  ;;  %v452_v4 = vmul.f32 %v977_v26, %v451_v62  ;;  %v455_v6 = vmul.f32 %v980_v27, %v454_v63  ;;  %p749_p5 = scmp.ne.s32.totalorder %s1113_s25, %s748_s10  ;;  %p755_p13 = scmp.lt.s32.totalorder %s1113_s25, %s753_s11 }
  0x64   : > { %v446_v5 = vadd.f32 %v445_v59, %v436_v61  ;;  %v457_v7 = vmul.f32 %v980_v27, %v451_v62  ;;  %v468_v12 = vmul.f32 %v467_v0, %v939_v8  ;;  %v459_v14 = vmul.f32 %v977_v26, %v454_v63 }
  0x65   : > { %v444_v13 = vsub.f32 %v441_v3, %v443_v58  ;;  %v470_v15 = vstv %s1054_s17  ;;  %v473_v18 = vmul.f32 %v467_v0, %v942_v9  ;;  %v479_v22 = vstv %s1058_s19  ;;  %p750_p11 = pnand %p749_p5, %p1164_p10  ;;  %s754_s17 = scalar_lea.vmem %s753_s11, 256 }
  0x66   : > { %v448_v19 = vadd.f32 %v447_v60, %v446_v5  ;;  %v471_v20 = vmul.f32 %v470_v15, %v942_v9  ;;  %v475_v21 = vmul.f32 %v470_v15, %v939_v8  ;;  %v480_v24 = vmul.f32 %v949_v10, %v479_v22  ;;  %p756_p0 = scmp.lt.s32.totalorder %s754_s17, %s748_s10 }
  0x67   : > { %v453_v23 = vadd.f32 %v452_v4, %v444_v13  ;;  %v482_v25 = vstv %s1062_s20  ;;  %v485_v28 = vmul.f32 %v952_v11, %v479_v22  ;;  %v491_v35 = vstv %s1068_s26  ;;  %p751_p12 = pneg %p750_p11 }
  0x68   : > { %v458_v29 = vadd.f32 %v457_v7, %v448_v19  ;;  %v472_v30 = vsub.f32 %v468_v12, %v471_v20  ;;  %v476_v31 = vadd.f32 %v475_v21, %v473_v18  ;;  %v483_v32 = vmul.f32 %v952_v11, %v482_v25  ;;  %p757_p1 = por %p756_p0, %p755_p13 }
  0x69   : > { %v456_v33 = vsub.f32 %v453_v23, %v455_v6  ;;  %v487_v34 = vmul.f32 %v949_v10, %v482_v25  ;;  %v494_v9 = vstv %s1070_s27  ;;  %v492_v38 = vmul.f32 %v961_v16, %v491_v35 }
  0x6a   : > { %v460_v8 = vadd.f32 %v459_v14, %v458_v29  ;;  %v481_v36 = vadd.f32 %v480_v24, %v472_v30  ;;  %v486_v37 = vadd.f32 %v485_v28, %v476_v31  ;;  %v359_v39 = vadd.f32 %v358_v54, %v357_v53  ;;  %p758_p2 = pnand %p757_p1, %p751_p12 }
  0x6b   : > { %v495_v40 = vmul.f32 %v964_v17, %v494_v9  ;;  %v497_v41 = vmul.f32 %v964_v17, %v491_v35  ;;  %v499_v11 = vmul.f32 %v961_v16, %v494_v9  ;;  %v503_v44 = vstv %s1079_s28 }
  0x6c   : > { %v484_v42 = vsub.f32 %v481_v36, %v483_v32  ;;  %v488_v43 = vadd.f32 %v487_v34, %v486_v37  ;;  %v411_v45 = vadd.f32 %v410_v2, %v409_v1  ;;  %v461_v10 = vmul.f32 %v456_v33, %v456_v33 }
  0x6d   : > { %v462_v46 = vmul.f32 %v460_v8, %v460_v8  ;;  %v506_v47 = vstv %s1084_s29  ;;  %v504_v50 = vmul.f32 %v977_v26, %v503_v44  ;;  %v509_v51 = vmul.f32 %v980_v27, %v503_v44 }
  0x6e   : > { %v493_v48 = vadd.f32 %v492_v38, %v484_v42  ;;  %v498_v49 = vadd.f32 %v497_v41, %v488_v43  ;;  %v507_v17 = vmul.f32 %v980_v27, %v506_v47  ;;  %v511_v54 = vmul.f32 %v977_v26, %v506_v47 }
  0x6f   : > { %v412_v16 = vadd.f32 %v411_v45, %v359_v39  ;;  %v463_v55 = vadd.f32 %v462_v46, %v461_v10 }
  0x70   : > { %v496_v52 = vsub.f32 %v493_v48, %v495_v40  ;;  %v500_v53 = vadd.f32 %v499_v11, %v498_v49 }
  0x71   : > { %v464_v60 = vsub.f32 %v412_v16, %v463_v55 }
  0x72   : > { %v505_v56 = vadd.f32 %v504_v50, %v496_v52  ;;  %v510_v57 = vadd.f32 %v509_v51, %v500_v53 }
  0x74   : > { %v508_v58 = vsub.f32 %v505_v56, %v507_v17  ;;  %v512_v59 = vadd.f32 %v511_v54, %v510_v57 }
  0x76   : > { %v513_v61 = vmul.f32 %v508_v58, %v508_v58  ;;  %v514_v62 = vmul.f32 %v512_v59, %v512_v59 }
  0x78   : > { %v515_v63 = vadd.f32 %v514_v62, %v513_v61 }
  0x7a   : > { %v516_v0 = vsub.f32 %v464_v60, %v515_v63 }
  0x7c   : > { %v517_v27 = vsub.f32 1.0, %v516_v0 }
  0x7e   : > { %v518_v1 = vmul.f32 0.5, %v517_v27 }
  0x80   : > { %519 = vst [vmem:[%s294_s5] sm:$0xff] %v518_v1 }
  0x81   : > { %761 = shalt.err (!%p758_p2)
}
  0x82   : > { %s762_s22 = scalar_lea.hbm %s1111_s8, 128  ;;  %s766_s26 = scalar_lea.hbm %s1158_s3, 256 }
  0x83   : > { %p763_p3 = scmp.ne.s32.totalorder %s1111_s8, %s762_s22  ;;  %p767_p8 = scmp.lt.u32.totalorder %s1111_s8, %s1158_s3 }
  0x84   : > { %p768_p9 = scmp.lt.u32.totalorder %s766_s26, %s762_s22  ;;  %p770_p11 = scmp.lt.u32.totalorder %s762_s22, %s1111_s8 }
  0x85   : > { %p764_p4 = pnand %p763_p3, %p1164_p10 }
  0x86   : > { %p769_p5 = por %p768_p9, %p767_p8 }
  0x87   : > { %p765_p7 = pneg %p764_p4 }
  0x88   : > { %p771_p12 = por %p770_p11, %p769_p5 }
  0x8a   : > { %p772_p13 = pnand %p771_p12, %p765_p7 }
  0x8c   : > { %775 = shalt.err (!%p772_p13)
}
  0x8d   : > { %687 = dma.vmem_to_hbm [thread:$0]  (%p1164_p10), %s1113_s25, 128, %s1111_s8, %s521_s9  }
  0x8e PF: > { %s546_s29 = sand.u32 1, %s802_s12   ;;  %p1165_p0 = scmp.ne.s32.totalorder %s1162_s24, 0 }
  0x8f   : > { %s547_s30 = scalar_lea.sflag [#allocation3], %s546_s29 }
  0x90   : > { %p694_p1 = pnand %p632_p6, %p1165_p0 }
  0x92   : > { %797 = dma.done.wait (!%p694_p1), %s547_s30, 128  }
  0x93   : > { %799 = vsyncadd (!%p694_p1), %s547_s30, 4294967168  ;;  %p14_p2 = scmp.ge.s32.totalorder %s863_s18, 4   ;;  %s1166_s12 = smov %s806_s13 }
  0x94   : > { %s1167_s13 = smov %s810_s14  ;;  %s1168_s14 = smov %s875_s21 }
  0x95   : > { %s1169_s15 = smov %s863_s18  ;;  %16 = sbr.rel (!%p14_p2) target bundleno = 4 (0x4), region = 167 }
  0x9c   :  { %552 = vsyncpa [#allocation3], 1 }
  0x9d   :  { %554 = vsyncpa [#allocation3 + $0x1], 1 }
  0x9e   :  { %555 = vsyncpa [#allocation4], 1 }
  0x9f   :  { %557 = vsyncpa [#allocation4 + $0x1], 1 }

</bundles_post_ra>
